<compile_context>
chip_gen: v7x
topology: tpu7x:2x2x1
jax: 0.10.0
libtpu: 0.0.40
codegen_flags: <defaults>
</compile_context>

<pallas_src>
from functools import lru_cache, partial

import jax
import jax.numpy as jnp
from jax import lax
from jax.experimental import pallas as pl
from jax.experimental.pallas import tpu as pltpu


# ---------------------------------------------------------------------------
# One-time probe: pin down pltpu.roll's direction convention so the conv taps
# are correct regardless of the rotate convention the lowering uses.
# ---------------------------------------------------------------------------
@lru_cache(maxsize=None)
def _pltpu_roll_is_numpy_convention():
    def probe(x_ref, o_ref):
        o_ref[...] = pltpu.roll(x_ref[...], 1, 1)

    x = lax.broadcasted_iota(jnp.float32, (8, 128), 1)
    out = pl.pallas_call(probe, out_shape=jax.ShapeDtypeStruct((8, 128), jnp.float32))(x)
    # numpy convention: out[i] = x[i-1]  ->  out[:, 1] == 0
    return bool(out[0, 1] == 0.0)


# ---------------------------------------------------------------------------
# Fused kernel: depthwise convs + gated value + block-diag sparse attention +
#               lepe add + 1x1 projection, per batch element.
# ---------------------------------------------------------------------------
def _adaptive_hf_kernel(x_ref, y_ref, w1_ref, w2_ref, we_ref, temp_ref,
                        scal_ref, wp_ref, o_ref, *, W, num_heads, roll_numpy):
    # x/y/o: (1, C, HW); w1/w2: (C, 9); we/temp: (C, 1); scal: (2,) SMEM; wp: (C, C)
    C = x_ref.shape[1]
    HW = x_ref.shape[2]
    Cph = C // num_heads
    k1 = Cph // 2              # int(C/2)   in the PyTorch code (C there == Cph)
    k2 = (Cph * 4) // 5        # int(C*4/5)
    f32 = jnp.float32
    neg = f32(-1e30)           # masked logits -> exp underflows to exactly 0

    x = x_ref[0].astype(f32)   # (C, HW), single bf16->f32 upcast

    # ---- depthwise 3x3 convs (q, k) on the flattened spatial axis ----------
    # Tap (dy, dx) is an XLU lane rotation of the flattened row by dy*W + dx;
    # out-of-image samples (including any rotation wrap-around) always land in a
    # masked position, so row/column edge masks make the tap exact.
    lane = lax.broadcasted_iota(jnp.int32, (C, HW), 1)
    col = lane % W
    not_top = lane >= W
    not_bottom = lane < (HW - W)
    not_left = col != 0
    not_right = col != (W - 1)

    w1 = w1_ref[...]
    w2 = w2_ref[...]
    q = None
    k = None
    for dy in (-1, 0, 1):                                   # static 3x3 taps, unrolled
        for dx in (-1, 0, 1):
            off = dy * W + dx
            t = (dy + 1) * 3 + (dx + 1)
            if off == 0:
                win = x
            else:
                shift = (-off) % HW if roll_numpy else off % HW
                win = pltpu.roll(x, shift, 1)               # XLU, no VMEM copy
            m = None
            if dy == -1:
                m = not_top
            elif dy == 1:
                m = not_bottom
            if dx == -1:
                m = not_left if m is None else jnp.logical_and(m, not_left)
            elif dx == 1:
                m = not_right if m is None else jnp.logical_and(m, not_right)
            if m is not None:
                win = jnp.where(m, win, 0.0)
            qc = w1[:, t:t + 1] * win                       # per-channel weight
            kc = w2[:, t:t + 1] * win
            q = qc if q is None else q + qc
            k = kc if k is None else k + kc

    # ---- multi-head channel attention as ONE block-diagonal C-wide matmul ---
    # F.normalize(dim=-1): x / max(||x||2, 1e-12)
    qn = q / jnp.maximum(jnp.sqrt(jnp.sum(q * q, -1, keepdims=True)), 1e-12)
    kn = k / jnp.maximum(jnp.sqrt(jnp.sum(k * k, -1, keepdims=True)), 1e-12)
    attn = lax.dot_general(qn, kn, (((1,), (1,)), ((), ())),
                           preferred_element_type=f32)      # (C, C) f32 (selection-critical)
    attn = attn * temp_ref[...]                             # per-head temperature, (C,1) rows
    rh = lax.broadcasted_iota(jnp.int32, (C, C), 0) // Cph
    ch = lax.broadcasted_iota(jnp.int32, (C, C), 1) // Cph
    attn = jnp.where(rh == ch, attn, neg)                   # cross-head entries can never win

    # k-th largest value per row via iterative max-extract (k2 <= Cph steps); step 0
    # also yields the row max reused by the shared softmax below.
    # TODO(synk): torch.topk tie-breaking by index is not reproduced; identical when no ties.
    work = attn
    row_max = thr1 = thr2 = None
    for t in range(k2):
        cur = jnp.max(work, axis=-1, keepdims=True)
        if t == 0:
            row_max = cur
        if t == k1 - 1:
            thr1 = cur
        if t == k2 - 1:
            thr2 = cur
        if t < k2 - 1:
            work = jnp.where(work >= cur, neg, work)

    # Shared softmax: ONE exp, two masked row-sums; attn1/attn2 scales folded into the
    # (C,1) reciprocal columns.  (p1*a1 + p2*a2) @ v collapses into one matmul.
    e = jnp.exp(attn - row_max)                              # masked entries -> exactly 0
    m1 = attn >= thr1
    m2 = attn >= thr2
    s1 = jnp.sum(jnp.where(m1, e, 0.0), axis=-1, keepdims=True)
    s2 = jnp.sum(jnp.where(m2, e, 0.0), axis=-1, keepdims=True)
    c1 = scal_ref[0] * pl.reciprocal(s1, approx=True)        # EUP slot
    c2 = scal_ref[1] * pl.reciprocal(s2, approx=True)
    p = e * (jnp.where(m1, c1, 0.0) + jnp.where(m2, c2, 0.0))

    # Gated value, computed only now to keep (C,HW) live ranges short during attention.
    y = y_ref[0].astype(f32)
    v = jax.nn.sigmoid(y) * x + y                            # input_y = sigmoid(y)*x + y
    out = jnp.dot(p.astype(jnp.bfloat16), v.astype(jnp.bfloat16),
                  preferred_element_type=f32)                # (C, HW), f32 accumulation

    lepe = we_ref[...] * x                                   # 1x1 depthwise == per-channel scale
    pre = out + lepe
    # project_out (1x1 conv) == channel-mixing matmul, bf16 operands / f32 accumulation
    o_ref[0] = jnp.dot(wp_ref[...], pre.astype(jnp.bfloat16),
                       preferred_element_type=f32).astype(o_ref.dtype)


# ---------------------------------------------------------------------------
# Public wrapper: NCHW in / NCHW out (bf16), same math as AdaptiveHF.forward(x, y).
# ---------------------------------------------------------------------------
def adaptive_hf_forward(x, y, params, num_heads):
    B, C, H, W = x.shape
    HW = H * W
    Cph = C // num_heads

    # bf16 at the HBM boundary; f32 math inside the kernel.
    xf = x.reshape(B, C, HW).astype(jnp.bfloat16)
    yf = y.reshape(B, C, HW).astype(jnp.bfloat16)
    w1 = params["dw1"].reshape(C, 9).astype(jnp.float32)     # (C,1,3,3) -> (C,9), tap=(dy+1)*3+(dx+1)
    w2 = params["dw2"].reshape(C, 9).astype(jnp.float32)
    we = params["epe"].reshape(C, 1).astype(jnp.float32)     # (C,1,1,1) -> (C,1)
    temp_c = jnp.repeat(params["temperature"].reshape(num_heads), Cph).reshape(C, 1).astype(jnp.float32)
    scal = jnp.concatenate([params["attn1"], params["attn2"]]).astype(jnp.float32)
    wp = params["proj"][:, :, 0, 0].astype(jnp.bfloat16)     # (C, C), pre-cast once for the MXU

    img_spec = pl.BlockSpec((1, C, HW), lambda b: (b, 0, 0))
    cst2 = lambda b: (0, 0)

    cost = pl.CostEstimate(
        flops=B * (2 * 2 * 9 * C * HW + 3 * 2 * C * C * HW),        # convs + 3 matmuls
        transcendentals=B * (C * HW + C * C),                        # sigmoid + exp
        bytes_accessed=3 * B * C * HW * 2 + (2 * 9 * C + 2 * C + 2) * 4 + C * C * 2,
    )

    out = pl.pallas_call(
        partial(_adaptive_hf_kernel, W=W, num_heads=num_heads,
                roll_numpy=_pltpu_roll_is_numpy_convention()),
        grid=(B,),
        in_specs=[
            img_spec,                                        # x (bf16)
            img_spec,                                        # y (bf16)
            pl.BlockSpec((C, 9), cst2),                      # dw_conv1 weights
            pl.BlockSpec((C, 9), cst2),                      # dw_conv2 weights
            pl.BlockSpec((C, 1), cst2),                      # epe weight
            pl.BlockSpec((C, 1), cst2),                      # per-channel temperature
            pl.BlockSpec(memory_space=pltpu.MemorySpace.SMEM),   # [attn1, attn2]
            pl.BlockSpec((C, C), cst2),                      # projection weight (bf16)
        ],
        out_specs=pl.BlockSpec((1, C, HW), lambda b: (b, 0, 0)),    # lane-dense: HW % 128 == 0
        out_shape=jax.ShapeDtypeStruct((B, C, HW), jnp.bfloat16),
        compiler_params=pltpu.CompilerParams(
            dimension_semantics=("parallel",),
            vmem_limit_bytes=32 * 1024 * 1024,
        ),
        cost_estimate=cost,
    )(xf, yf, w1, w2, we, temp_c, scal, wp)
    return out.reshape(B, C, H, W)


# ---------------------------------------------------------------------------
# Pure-JAX reference (mirrors the PyTorch forward) for validation.
# HIGHEST precision so the selection-critical attn matches the kernel's f32 math.
# ---------------------------------------------------------------------------
def reference_forward(x, y, params, num_heads):
    B, C, H, W = x.shape
    dn = ("NCHW", "OIHW", "NCHW")
    hi = lax.Precision.HIGHEST
    q = lax.conv_general_dilated(x, params["dw1"], (1, 1), ((1, 1), (1, 1)),
                                 dimension_numbers=dn, feature_group_count=C, precision=hi)
    k = lax.conv_general_dilated(x, params["dw2"], (1, 1), ((1, 1), (1, 1)),
                                 dimension_numbers=dn, feature_group_count=C, precision=hi)
    lepe = params["epe"][:, 0, 0, 0][None, :, None, None] * x
    vy = jax.nn.sigmoid(y) * x + y
    Cph = C // num_heads
    toh = lambda t: t.reshape(B, num_heads, Cph, H * W)
    qx, kx, vx = toh(q), toh(k), toh(vy)
    l2n = lambda t: t / jnp.maximum(jnp.sqrt(jnp.sum(t * t, -1, keepdims=True)), 1e-12)
    qx, kx = l2n(qx), l2n(kx)
    attn = jnp.einsum("bhcd,bhed->bhce", qx, kx, precision=hi) * params["temperature"][None]

    def masked_softmax(a, kk):
        idx = lax.top_k(a, kk)[1]
        m = jnp.sum(jax.nn.one_hot(idx, a.shape[-1], dtype=a.dtype), axis=-2) > 0
        return jax.nn.softmax(jnp.where(m, a, -jnp.inf), axis=-1)

    p1 = masked_softmax(attn, Cph // 2)
    p2 = masked_softmax(attn, (Cph * 4) // 5)
    out = (p1 @ vx) * params["attn1"] + (p2 @ vx) * params["attn2"]
    out = out.reshape(B, C, H, W)
    pre = out + lepe
    return jnp.einsum("oc,bchw->bohw", params["proj"][:, :, 0, 0], pre, precision=hi)


if __name__ == "__main__":
    B, C, H, W = 2, 16, 16, 16      # HW = 256: lane-dense blocks / output store
    num_heads = 4
    key = jax.random.PRNGKey(0)
    ks = jax.random.split(key, 7)
    # AdaptiveHF(in_dim=16, out_dim=16, num_heads=4, bias=False) parameter shapes
    params = {
        "dw1": 0.2 * jax.random.normal(ks[0], (C, 1, 3, 3), jnp.float32),
        "dw2": 0.2 * jax.random.normal(ks[1], (C, 1, 3, 3), jnp.float32),
        "epe": 0.2 * jax.random.normal(ks[2], (C, 1, 1, 1), jnp.float32),
        "proj": 0.2 * jax.random.normal(ks[3], (C, C, 1, 1), jnp.float32),
        "temperature": 0.5 + jax.random.uniform(ks[6], (num_heads, 1, 1), jnp.float32),
        "attn1": jnp.array([0.3], jnp.float32),
        "attn2": jnp.array([0.7], jnp.float32),
    }
    x = jax.random.normal(ks[4], (B, C, H, W), jnp.float32)
    y = jax.random.normal(ks[5], (B, C, H, W), jnp.float32)

    out = jax.block_until_ready(adaptive_hf_forward(x, y, params, num_heads))
    assert out.shape == (B, C, H, W) and out.dtype == jnp.bfloat16

    # Validate against the reference fed the same bf16-rounded inputs the kernel
    # consumes (bf16 I/O is the kernel's HBM contract); remaining error comes from
    # bf16 matmul operands, the approx-reciprocal softmax denominator and the bf16
    # output rounding.
    xq = x.astype(jnp.bfloat16).astype(jnp.float32)
    yq = y.astype(jnp.bfloat16).astype(jnp.float32)
    ref = reference_forward(xq, yq, params, num_heads)
    err = float(jnp.max(jnp.abs(out.astype(jnp.float32) - ref)))
    if not err < 8e-2:
        raise AssertionError(f"mismatch vs reference: max abs err = {err}")
    print("KERNEL_OK")
</pallas_src>

<mosaic_0001>
module attributes {stable_mosaic.version = 11 : i64} {
  func.func @probe(%arg0: memref<8x128xf32, #tpu.memory_space<vmem>>, %arg1: memref<8x128xf32, #tpu.memory_space<vmem>>) attributes {dimension_semantics = [], scalar_prefetch = 0 : i64, scratch_operands = 0 : i64, tpu.core_type = #tpu.core_type<tc>} {
    %c0 = arith.constant 0 : index
    %c0_0 = arith.constant 0 : index
    %0 = vector.load %arg0[%c0, %c0_0] : memref<8x128xf32, #tpu.memory_space<vmem>>, vector<8x128xf32>
    %c1_i32 = arith.constant 1 : i32
    %1 = tpu.dynamic_rotate %0 by %c1_i32 dim 1 : vector<8x128xf32>, i32 -> vector<8x128xf32>
    %c0_1 = arith.constant 0 : index
    %c0_2 = arith.constant 0 : index
    %2 = vector.load %arg1[%c0_1, %c0_2] : memref<8x128xf32, #tpu.memory_space<vmem>>, vector<8x128xf32>
    tpu.vector_store %arg1[%c0_1, %c0_2], %1 {strides = array<i32>} : memref<8x128xf32, #tpu.memory_space<vmem>>, vector<8x128xf32>,
    return
  }
}

</mosaic_0001>

<bundles_post_ra>
// kernel: tpu_custom_call.1
= control target key start
LH: loop header
LB: loop body
LE: loop exit
PB: predicated region body
PF: predicated region fallthrough
CT: control target
= control target key end

     0   :  { %6 = vsyncpa [#allocation3], 0  ;;  %s128_s0 = inlined_call_operand.hbm [shape: f32[8,128], index: 0, kind: input, shape index: {}]   ;;  %s129_s1 = inlined_call_operand.hbm [shape: f32[8,128], index: 1, kind: output, shape index: {}]  }
   0x1   :  { %7 = vsyncpa [#allocation4], 0  ;;  %s91_s6 = smov [#allocation2]   ;;  %s43_s10 = scalar_lea.hbm %s128_s0, 128 }
   0x2   :  { %s14_s7 = sshll.u32 %s91_s6, 4  ;;  %p44_p0 = scmp.ne.s32.totalorder %s128_s0, %s43_s10  ;;  %s15_s7 = int_to_ptr.vmem [resolvable:$true] %s14_s7 }
   0x3   :  { %p47_p1 = scmp.lt.u32.totalorder %s43_s10, %s128_s0 }
   0x5   :  { %p49_p2 = pnand %p47_p1, %p44_p0 }
   0x7   :  { %52 = shalt.err (!%p49_p2)
}
   0x8   :  { %s53_s15 = scalar_lea.vmem %s15_s7, 128  ;;  %p58_p4 = scmp.lt.s32.totalorder %s15_s7, %s15_s7 }
   0x9   :  { %p54_p3 = scmp.ne.s32.totalorder %s15_s7, %s53_s15  ;;  %p59_p5 = scmp.lt.s32.totalorder %s53_s15, %s53_s15 }
   0xb   :  { %p60_p6 = por %p59_p5, %p58_p4 }
   0xd   :  { %p61_p7 = pnand %p60_p6, %p54_p3 }
   0xf   :  { %64 = shalt.err (!%p61_p7)
}
  0x10   :  { %17 = dma.hbm_to_vmem [thread:$0]  %s128_s0, 128, %s15_s7, [#allocation3]  }
  0x11   :  { %87 = dma.done.wait [#allocation3], 128  }
  0x12   :  { %88 = vsyncadd [#allocation3], 4294967168  ;;  %v21_v0 = vld [vmem:[#allocation2] sm:$0xff]  ;;  %s92_s18 = smov 1   ;;  %s93_s19 = smov [#allocation5]  }
  0x13   :  { %22 = vrot.lane.b32.xlu0 %v21_v0, %s92_s18  ;;  %s31_s20 = sshll.u32 %s93_s19, 4  ;;  %s32_s20 = int_to_ptr.vmem [resolvable:$true] %s31_s20 }
  0x14   :  { %s65_s21 = scalar_lea.vmem %s32_s20, 128  ;;  %p70_p9 = scmp.lt.s32.totalorder %s32_s20, %s32_s20 }
  0x15   :  { %p66_p8 = scmp.ne.s32.totalorder %s32_s20, %s65_s21  ;;  %p71_p10 = scmp.lt.s32.totalorder %s65_s21, %s65_s21 }
  0x17   :  { %p72_p11 = por %p71_p10, %p70_p9 }
  0x19   :  { %p73_p12 = pnand %p72_p11, %p66_p8 }
  0x85   :  { %v23_v1 = vpop.permute.xlu0 %22 }
  0x86   :  { %24 = vst [vmem:[#allocation5] sm:$0xff] %v23_v1 }
  0x87   :  { %76 = shalt.err (!%p73_p12)
}
  0x88   :  { %s77_s0 = scalar_lea.hbm %s129_s1, 128 }
  0x89   :  { %p78_p13 = scmp.ne.s32.totalorder %s129_s1, %s77_s0  ;;  %p81_p0 = scmp.lt.u32.totalorder %s77_s0, %s129_s1 }
  0x8b   :  { %p83_p1 = pnand %p81_p0, %p78_p13 }
  0x8d   :  { %86 = shalt.err (!%p83_p1)
}
  0x8e   :  { %34 = dma.vmem_to_hbm [thread:$0]  %s32_s20, 128, %s129_s1, [#allocation4]  }
  0x8f   :  { %89 = dma.done.wait [#allocation4], 128  }
  0x90   :  { %90 = vsyncadd [#allocation4], 4294967168 }
  0x91   :  { %38 = vsyncpa [#allocation3], 1 }
  0x92   :  { %39 = vsyncpa [#allocation4], 1 }

</bundles_post_ra>
